<compile_context>
chip_gen: v7x
topology: tpu7x:2x2x1
jax: 0.10.0
libtpu: 0.0.40
codegen_flags: <defaults>
</compile_context>

<pallas_src>
import jax
import jax.numpy as jnp
import numpy as np
from jax.experimental import pallas as pl
from jax.experimental.pallas import tpu as pltpu


def pos_encode_kernel(ts_ref, emb_ref, out_ref):
    ts = ts_ref[...]          # [BT, L] float32
    emb = emb_ref[...]        # [L, D]  float32
    BT, L = ts.shape

    # Data-independent (L, L) iotas, built once and reused twice:
    #   row[i, j] = i  (doubles as the "sorted position" iota for the one-hot)
    #   col[i, j] = j
    row = jax.lax.broadcasted_iota(jnp.int32, (L, L), 0)
    col = jax.lax.broadcasted_iota(jnp.int32, (L, L), 1)
    tie_lt = col < row        # strictly-lower-triangular: index k precedes j iff k < j

    # Stable rank of each element within its row (pairwise compare on the VPU).
    t_j = ts[:, :, None]                                            # [BT, L, 1]
    t_k = ts[:, None, :]                                            # [BT, 1, L]
    precedes = (t_k < t_j) | ((t_k == t_j) & tie_lt[None, :, :])    # [BT, L, L]
    rank = jnp.sum(precedes.astype(jnp.int32), axis=2)              # [BT, L]

    # One-hot permutation P[b, i, j] = (rank[b, j] == i); reuse `row` as the i-iota.
    P = (rank[:, None, :] == row[None, :, :]).astype(jnp.float32)   # [BT, L, L]

    # Single MXU matmul for the whole batch tile: [BT*L, L] @ [L, D].
    # (Leading-dim-only reshape of P is layout-trivial; last dim is unchanged.)
    out_ref[...] = jnp.dot(
        P.reshape(BT * L, L), emb, preferred_element_type=jnp.float32
    ).astype(out_ref.dtype)


def pos_encode(ts, emb_table, *, batch_tile=None):
    """ts: [B, L] float32, emb_table: [L, D] float32 -> [B, L, D] float32."""
    B, L = ts.shape
    Lw, D = emb_table.shape
    assert Lw == L, "seq_len of embedding table must match ts sequence length"

    if batch_tile is None:
        batch_tile = B if B <= 8 else 8
    BT = batch_tile
    assert B % BT == 0, "batch must be divisible by the batch tile"

    out2d = pl.pallas_call(
        pos_encode_kernel,
        out_shape=jax.ShapeDtypeStruct((B * L, D), emb_table.dtype),
        grid=(B // BT,),
        in_specs=[
            pl.BlockSpec((BT, L), lambda b: (b, 0)),      # timestamps tile
            pl.BlockSpec((L, D), lambda b: (0, 0)),       # emb table, VMEM-resident
        ],
        out_specs=pl.BlockSpec((BT * L, D), lambda b: (b, 0)),
        compiler_params=pltpu.CompilerParams(
            dimension_semantics=("parallel",),            # use both TCs on v7x
            vmem_limit_bytes=32 * 1024 * 1024,            # safe on v5e/v6e/v7x
        ),
    )(ts, emb_table)

    return out2d.reshape(B, L, D)                         # free metadata reshape


if __name__ == "__main__":
    # Module config: dimension=32, seq_len=8; batch of 2 timestamp rows.
    dimension, seq_len, batch = 32, 8, 2

    key = jax.random.PRNGKey(0)
    k_emb, k_ts = jax.random.split(key)

    # Deterministic synthetic parameters (torch.nn.Embedding weight ~ N(0, 1)).
    emb_table = jax.random.normal(k_emb, (seq_len, dimension), dtype=jnp.float32)
    # Timestamps: random floats, shape [B, L] (no NaNs).
    ts = jax.random.uniform(k_ts, (batch, seq_len), dtype=jnp.float32)

    out = pos_encode(ts, emb_table)
    out = jax.block_until_ready(out)

    # Pure-JAX reference of the torch forward: emb_table[argsort(ts)]
    order = jnp.argsort(ts, axis=-1)
    ref = emb_table[order]
    np.testing.assert_allclose(np.asarray(out), np.asarray(ref), rtol=1e-6, atol=1e-6)

    print("KERNEL_OK")
</pallas_src>

<mosaic_0001>
module attributes {stable_mosaic.version = 11 : i64} {
  func.func @pos_encode_kernel(%arg0: i32, %arg1: memref<2x8xf32, #tpu.memory_space<vmem>>, %arg2: memref<8x32xf32, #tpu.memory_space<vmem>>, %arg3: memref<16x32xf32, #tpu.memory_space<vmem>>) attributes {dimension_semantics = [#tpu.dimension_semantics<parallel>], iteration_bounds = array<i64: 1>, scalar_prefetch = 0 : i64, scratch_operands = 0 : i64, tpu.core_type = #tpu.core_type<tc>, window_params = [{transform_indices = @transform_0, window_bounds = array<i64: 2, 8>}, {pipeline_mode = #tpu.pipeline_mode<synchronous>, transform_indices = @transform_1, window_bounds = array<i64: 8, 32>}, {transform_indices = @transform_2, window_bounds = array<i64: 16, 32>}]} {
    %c0 = arith.constant 0 : index
    %c0_0 = arith.constant 0 : index
    %0 = vector.load %arg1[%c0, %c0_0] : memref<2x8xf32, #tpu.memory_space<vmem>>, vector<2x8xf32>
    %c0_1 = arith.constant 0 : index
    %c0_2 = arith.constant 0 : index
    %1 = vector.load %arg2[%c0_1, %c0_2] : memref<8x32xf32, #tpu.memory_space<vmem>>, vector<8x32xf32>
    %2 = tpu.iota {dimensions = array<i32: 0>} : vector<8x8xi32>
    %3 = tpu.iota {dimensions = array<i32: 1>} : vector<8x8xi32>
    %4 = arith.cmpi slt, %3, %2 : vector<8x8xi32>
    %5 = vector.shape_cast %0 : vector<2x8xf32> to vector<2x8x1xf32>
    %6 = vector.shape_cast %0 : vector<2x8xf32> to vector<2x1x8xf32>
    %7 = vector.broadcast %6 : vector<2x1x8xf32> to vector<2x8x8xf32>
    %8 = vector.broadcast %5 : vector<2x8x1xf32> to vector<2x8x8xf32>
    %9 = arith.cmpf olt, %7, %8 : vector<2x8x8xf32>
    %10 = vector.broadcast %6 : vector<2x1x8xf32> to vector<2x8x8xf32>
    %11 = vector.broadcast %5 : vector<2x8x1xf32> to vector<2x8x8xf32>
    %12 = arith.cmpf oeq, %10, %11 : vector<2x8x8xf32>
    %13 = vector.shape_cast %4 : vector<8x8xi1> to vector<1x8x8xi1>
    %14 = vector.broadcast %13 : vector<1x8x8xi1> to vector<2x8x8xi1>
    %15 = arith.andi %12, %14 : vector<2x8x8xi1>
    %16 = arith.ori %9, %15 : vector<2x8x8xi1>
    %17 = arith.extui %16 : vector<2x8x8xi1> to vector<2x8x8xi32>
    %cst = arith.constant dense<0> : vector<2x8xi32>
    %18 = vector.multi_reduction <add>, %17, %cst [2] : vector<2x8x8xi32> to vector<2x8xi32>
    %19 = vector.shape_cast %18 : vector<2x8xi32> to vector<2x1x8xi32>
    %20 = vector.shape_cast %2 : vector<8x8xi32> to vector<1x8x8xi32>
    %21 = vector.broadcast %19 : vector<2x1x8xi32> to vector<2x8x8xi32>
    %22 = vector.broadcast %20 : vector<1x8x8xi32> to vector<2x8x8xi32>
    %23 = arith.cmpi eq, %21, %22 : vector<2x8x8xi32>
    %24 = arith.extui %23 : vector<2x8x8xi1> to vector<2x8x8xi32>
    %25 = arith.sitofp %24 : vector<2x8x8xi32> to vector<2x8x8xf32>
    %26 = vector.shape_cast %25 : vector<2x8x8xf32> to vector<16x8xf32>
    %cst_3 = arith.constant dense<0.000000e+00> : vector<16x32xf32>
    %27 = tpu.matmul %26, %1, %cst_3 {dimension_numbers = #tpu.dot_dimension_numbers<[1], [0], [0], [1], [0, 0, 1, 1], [], []>} : vector<16x8xf32>, vector<8x32xf32>, vector<16x32xf32> -> vector<16x32xf32>
    %c0_4 = arith.constant 0 : index
    %c0_5 = arith.constant 0 : index
    %28 = vector.load %arg3[%c0_4, %c0_5] : memref<16x32xf32, #tpu.memory_space<vmem>>, vector<16x32xf32>
    tpu.vector_store %arg3[%c0_4, %c0_5], %27 {strides = array<i32>} : memref<16x32xf32, #tpu.memory_space<vmem>>, vector<16x32xf32>,
    return
  }
  func.func @transform_0(%arg0: i32) -> (i32, i32) {
    %c0_i32 = arith.constant 0 : i32
    %c0_i32_0 = arith.constant 0 : i32
    return %arg0, %c0_i32 : i32, i32
  }
  func.func @transform_1(%arg0: i32) -> (i32, i32) {
    %c0_i32 = arith.constant 0 : i32
    %c0_i32_0 = arith.constant 0 : i32
    %c0_i32_1 = arith.constant 0 : i32
    return %c0_i32, %c0_i32_0 : i32, i32
  }
  func.func @transform_2(%arg0: i32) -> (i32, i32) {
    %c0_i32 = arith.constant 0 : i32
    %c0_i32_0 = arith.constant 0 : i32
    return %arg0, %c0_i32 : i32, i32
  }
}

</mosaic_0001>

<bundles_post_ra>
// kernel: tpu_custom_call.1
= control target key start
LH: loop header
LB: loop body
LE: loop exit
PB: predicated region body
PF: predicated region fallthrough
CT: control target
= control target key end

     0   :  { %7 = vsyncpa [#allocation3], 0  ;;  %s708_s0 = inlined_call_operand.hbm [shape: f32[2,8], index: 0, kind: input, shape index: {}]   ;;  %s709_s1 = inlined_call_operand.hbm [shape: f32[8,32], index: 1, kind: input, shape index: {}]   ;;  %s710_s2 = inlined_call_operand.hbm [shape: f32[16,32], index: 2, kind: output, shape index: {}]  }
   0x1   :  { %8 = vsyncpa [#allocation6], 0 }
   0x2   :  { %9 = vsyncpa [#allocation4], 0  ;;  %s606_s9 = smov [#allocation2]   ;;  %s607_s11 = smov [#allocation5]  }
   0x3   :  { %s16_s10 = sshll.u32 %s606_s9, 4  ;;  %s26_s12 = sshll.u32 %s607_s11, 4  ;;  %s17_s10 = int_to_ptr.vmem [resolvable:$true] %s16_s10  ;;  %s27_s12 = int_to_ptr.vmem [resolvable:$true] %s26_s12 }
   0x4   :  { %s534_s15 = scalar_lea.hbm %s708_s0, 32 }
   0x5   :  { %p535_p0 = scmp.ne.s32.totalorder %s708_s0, %s534_s15  ;;  %p538_p1 = scmp.lt.u32.totalorder %s534_s15, %s708_s0 }
   0x7   :  { %p540_p2 = pnand %p538_p1, %p535_p0 }
   0x9   :  { %543 = shalt.err (!%p540_p2)
}
   0xa   :  { %s544_s20 = scalar_lea.vmem %s17_s10, 32  ;;  %p549_p4 = scmp.lt.s32.totalorder %s17_s10, %s17_s10 }
   0xb   :  { %p545_p3 = scmp.ne.s32.totalorder %s17_s10, %s544_s20  ;;  %p550_p5 = scmp.lt.s32.totalorder %s544_s20, %s544_s20 }
   0xd   :  { %p551_p6 = por %p550_p5, %p549_p4 }
   0xf   :  { %p552_p7 = pnand %p551_p6, %p545_p3 }
  0x11   :  { %555 = shalt.err (!%p552_p7)
}
  0x12   :  { %19 = dma.hbm_to_vmem [thread:$0]  %s708_s0, 32, %s17_s10, [#allocation3]  }
  0x13   :  { %s556_s25 = scalar_lea.hbm %s709_s1, 128 }
  0x14   :  { %p557_p8 = scmp.ne.s32.totalorder %s709_s1, %s556_s25  ;;  %p560_p9 = scmp.lt.u32.totalorder %s556_s25, %s709_s1 }
  0x16   :  { %p562_p10 = pnand %p560_p9, %p557_p8 }
  0x18   :  { %565 = shalt.err (!%p562_p10)
}
  0x19   :  { %s566_s30 = scalar_lea.vmem %s27_s12, 128  ;;  %p571_p12 = scmp.lt.s32.totalorder %s27_s12, %s27_s12 }
  0x1a   :  { %p567_p11 = scmp.ne.s32.totalorder %s27_s12, %s566_s30  ;;  %p572_p13 = scmp.lt.s32.totalorder %s566_s30, %s566_s30 }
  0x1c   :  { %p573_p0 = por %p572_p13, %p571_p12 }
  0x1e   :  { %p574_p1 = pnand %p573_p0, %p567_p11 }
  0x20   :  { %577 = shalt.err (!%p574_p1)
}
  0x21   :  { %29 = dma.hbm_to_vmem [thread:$0]  %s709_s1, 128, %s27_s12, [#allocation6]  }
  0x22   :  { %600 = dma.done.wait [#allocation3], 32  }
  0x23   :  { %601 = vsyncadd [#allocation3], 4294967264 }
  0x24   :  { %602 = dma.done.wait [#allocation6], 128  }
  0x25   :  { %603 = vsyncadd [#allocation6], 4294967168  ;;  %v38_v0 = vlaneseq  ;;  %v608_v1 = vmov 0   ;;  %v36_v5 = vld [vmem:[#allocation2] sm:$0x3]  ;;  %vm102_vm4 = vcmask 64512  }
  0x26   :  { %492 = vset.pattern.permute.xlu1 %v608_v1  ;;  %513 = vset.pattern.permute.xlu0 %v608_v1  ;;  %v609_v8 = vmov 1966171168   ;;  %v610_v49 = vmov 0.0   ;;  %s611_s1 = smov [#allocation7]  }
  0x27   :  { %v653_v2 = vshrl.u32 %v38_v0, 7  ;;  %v59_v9 = vunpack.c.l.s4 %v609_v8  ;;  %v658_v15 = vand.u32 127, %v38_v0  ;;  %s445_s4 = sshll.u32 %s611_s1, 4  ;;  %s446_s4 = int_to_ptr.vmem [resolvable:$true] %s445_s4 }
  0x28   :  { %s578_s5 = scalar_lea.vmem %s446_s4, 256  ;;  %p583_p3 = scmp.lt.s32.totalorder %s446_s4, %s446_s4 }
  0x29   :  { %v45_v3 = vsub.s32 0, %v653_v2  ;;  %v52_v4 = vsub.s32 1, %v653_v2  ;;  %v60_v10 = vunpack.c.0.s8 %v59_v9  ;;  %vm42_vm0 = vcmp.lt.s32.totalorder %v658_v15, %v653_v2  ;;  %p579_p2 = scmp.ne.s32.totalorder %s446_s4, %s578_s5  ;;  %p584_p4 = scmp.lt.s32.totalorder %s578_s5, %s578_s5 }
  0x2a   :  { %v151_v37 = vsub.s32 5, %v653_v2  ;;  %v139_v41 = vsub.s32 2, %v653_v2  ;;  %v143_v45 = vsub.s32 3, %v653_v2  ;;  %v147_v57 = vsub.s32 4, %v653_v2 }
  0x2b   :  { %v46_v6 = vrot.slane %v36_v5, %v45_v3  ;;  %v53_v7 = vrot.slane %v36_v5, %v52_v4  ;;  %v63_v11 = vsub.s32 %v60_v10, %v653_v2  ;;  %v136_v36 = vrot.slane %v653_v2, %v52_v4  ;;  %p585_p5 = por %p584_p4, %p583_p3 }
  0x2c   :  { %v132_v40 = vrot.slane %v653_v2, %v45_v3  ;;  %v152_v46 = vrot.slane %v653_v2, %v151_v37  ;;  %v140_v47 = vrot.slane %v653_v2, %v139_v41  ;;  %v144_v55 = vrot.slane %v653_v2, %v143_v45 }
  0x2d   :  { %48 = vbcast.lane.b32.xlu0 %v46_v6, 256  ;;  %v64_v12 = vrot.slane %v36_v5, %v63_v11  ;;  %v155_v58 = vsub.s32 6, %v653_v2  ;;  %p586_p6 = pnand %p585_p5, %p579_p2 }
  0x2f   :  { %v65_v13 = vcombine.high %v64_v12, %v64_v12  ;;  %v72_v14 = vrot.slane %v64_v12, %v63_v11  ;;  %v156_v6 = vrot.slane %v653_v2, %v155_v58 }
  0x31   :  { %55 = vbcast.lane.b32.xlu0 %v53_v7, 256  ;;  %v83_v16 = vrot.slane %v72_v14, %v45_v3  ;;  %v79_v17 = vrot.slane %v65_v13, %v63_v11  ;;  %v159_v7 = vsub.s32 7, %v653_v2 }
  0x33   :  { %v87_v19 = vrot.slane %v79_v17, %v45_v3  ;;  %v160_v11 = vrot.slane %v653_v2, %v159_v7 }
  0x9f   :  { %v49_v18 = vpop.permute.xlu0 %48 }
  0xa0   :  { %vm90_vm1 = vcmp.lt.f32.partialorder %v83_v16, %v49_v18  ;;  %vm92_vm2 = vcmp.eq.f32.partialorder %v83_v16, %v49_v18 }
  0xa1   :  { %vm96_vm3 = vmand %vm92_vm2, %vm42_vm0 }
  0xa2   :  { %vm98_vm5 = vmor %vm90_vm1, %vm96_vm3 }
  0xa3   :  { %v56_v20 = vpop.permute.xlu0 %55  ;;  %v100_v21 = vsel %vm98_vm5, 1, %v608_v1 }
  0xa4   :  { %vm91_vm6 = vcmp.lt.f32.partialorder %v87_v19, %v56_v20  ;;  %vm93_vm7 = vcmp.eq.f32.partialorder %v87_v19, %v56_v20  ;;  %v103_v22 = vsel %vm102_vm4, %v100_v21, 0 }
  0xa5   :  { %vm97_vm8 = vmand %vm93_vm7, %vm42_vm0  ;;  %v105_v23 = vshrl.u32 %v103_v22, 16  ;;  %v104_v24 = vand.u32 65535, %v103_v22  ;;  %v37_v22 = vld [vmem:[#allocation5] sm:$0xff] }
  0xa6   :  { %vm99_vm9 = vmor %vm91_vm6, %vm97_vm8  ;;  %479 = vmatprep.subr.mxu0 %v37_v22 }
  0xa7   :  { %v101_v25 = vsel %vm99_vm9, 1, %v608_v1  ;;  %v107_v26 = vcvt.s32.f32 %v105_v23  ;;  %v106_v27 = vcvt.s32.f32 %v104_v24  ;;  %v148_v1 = vrot.slane %v653_v2, %v147_v57  ;;  %480 = vmatpush3.msra.mxu0 %v37_v22 }
  0xa8   :  { %v116_v28 = vsel %vm102_vm4, %v101_v25, 0 }
  0xa9   :  { %110 = vadd.xlane.f32.xlu1 %v107_v26  ;;  %108 = vadd.xlane.f32.xlu0 %v106_v27  ;;  %v118_v29 = vshrl.u32 %v116_v28, 16  ;;  %v117_v31 = vand.u32 65535, %v116_v28  ;;  %v275_v26 = vsub.s32 %v658_v15, %v653_v2 }
  0xab   :  { %v120_v30 = vcvt.s32.f32 %v118_v29  ;;  %v119_v32 = vcvt.s32.f32 %v117_v31 }
  0xad   :  { %123 = vadd.xlane.f32.xlu1 %v120_v30 }
  0xb1   :  { %121 = vadd.xlane.f32.xlu1 %v119_v32 }
 0x136   :  { %v111_v33 = vpop.xlane.xlu1 %110  ;;  %v109_v34 = vpop.xlane.xlu0 %108 }
 0x137   :  { %v113_v35 = vcvt.f32.s32 %v111_v33  ;;  %v112_v39 = vcvt.f32.s32 %v109_v34 }
 0x139   :  { %v114_v38 = vshll.u32 %v113_v35, 16 }
 0x13a   :  { %v124_v42 = vpop.xlane.xlu1 %123 }
 0x13b   :  { %v115_v43 = vadd.s32 %v114_v38, %v112_v39  ;;  %v126_v44 = vcvt.f32.s32 %v124_v42 }
 0x13d   :  { %vm161_vm10 = vcmp.eq.s32.totalorder %v115_v43, %v132_v40  ;;  %vm162_vm11 = vcmp.eq.s32.totalorder %v115_v43, %v136_v36  ;;  %v127_v52 = vshll.u32 %v126_v44, 16  ;;  %vm166_vm12 = vcmp.eq.s32.totalorder %v115_v43, %v152_v46 }
 0x13e   :  { %v122_v48 = vpop.xlane.xlu1 %121  ;;  %v458_v50 = vsel %vm161_vm10, 1.0, %v610_v49  ;;  %v459_v51 = vsel %vm162_vm11, 1.0, %v610_v49  ;;  %vm163_vm13 = vcmp.eq.s32.totalorder %v115_v43, %v140_v47  ;;  %v463_v59 = vsel %vm166_vm12, 1.0, %v610_v49 }
 0x13f   :  { %v125_v53 = vcvt.f32.s32 %v122_v48  ;;  %v493_v54 = vpack.i.bf16 %v459_v51, %v458_v50  ;;  %v460_v61 = vsel %vm163_vm13, 1.0, %v610_v49  ;;  %vm164_vm1 = vcmp.eq.s32.totalorder %v115_v43, %v144_v55 }
 0x140   :  { %v461_v4 = vsel %vm164_vm1, 1.0, %v610_v49  ;;  %vm165_vm3 = vcmp.eq.s32.totalorder %v115_v43, %v148_v1  ;;  %vm167_vm6 = vcmp.eq.s32.totalorder %v115_v43, %v156_v6  ;;  %vm168_vm8 = vcmp.eq.s32.totalorder %v115_v43, %v160_v11 }
 0x141   :  { %v128_v56 = vadd.s32 %v127_v52, %v125_v53  ;;  %494 = vperm.xlu1 %492, %v493_v54   ;;  %v462_v9 = vsel %vm165_vm3, 1.0, %v610_v49  ;;  %v464_v13 = vsel %vm167_vm6, 1.0, %v610_v49  ;;  %v465_v17 = vsel %vm168_vm8, 1.0, %v610_v49 }
 0x142   :  { %vm337_vm11 = vcmask 1041409   ;;  %vm339_vm12 = vcmask 1042434   ;;  %vm341_vm13 = vcmask 1043459   ;;  %vm349_vm1 = vcmask 1047559  }
 0x143   :  { %vm172_vm14 = vcmp.eq.s32.totalorder %v128_v56, %v144_v55  ;;  %vm169_vm15 = vcmp.eq.s32.totalorder %v128_v56, %v132_v40  ;;  %vm170_vm0 = vcmp.eq.s32.totalorder %v128_v56, %v136_v36  ;;  %vm171_vm2 = vcmp.eq.s32.totalorder %v128_v56, %v140_v47 }
 0x144   :  { %v469_v60 = vsel %vm172_vm14, 1.0, %v610_v49  ;;  %v466_v62 = vsel %vm169_vm15, 1.0, %v610_v49  ;;  %v467_v3 = vsel %vm170_vm0, 1.0, %v610_v49  ;;  %v468_v8 = vsel %vm171_vm2, 1.0, %v610_v49 }
 0x145   :  { %v514_v63 = vpack.i.bf16 %v463_v59, %v469_v60  ;;  %v498_v0 = vpack.i.bf16 %v466_v62, %v460_v61  ;;  %v503_v5 = vpack.i.bf16 %v461_v4, %v467_v3  ;;  %vm173_vm5 = vcmp.eq.s32.totalorder %v128_v56, %v148_v1 }
 0x146   :  { %v508_v10 = vpack.i.bf16 %v462_v9, %v468_v8  ;;  %v470_v12 = vsel %vm173_vm5, 1.0, %v610_v49  ;;  %vm174_vm7 = vcmp.eq.s32.totalorder %v128_v56, %v152_v46  ;;  %vm175_vm9 = vcmp.eq.s32.totalorder %v128_v56, %v156_v6 }
 0x147   :  { %515 = vperm.xlu0 %513, %v514_v63   ;;  %499 = vperm.xlu1 %492, %v498_v0   ;;  %v519_v14 = vpack.i.bf16 %v464_v13, %v470_v12  ;;  %v471_v16 = vsel %vm174_vm7, 1.0, %v610_v49  ;;  %vm176_vm10 = vcmp.eq.s32.totalorder %v128_v56, %v160_v11  ;;  %v472_v19 = vsel %vm175_vm9, 1.0, %v610_v49 }
 0x148   :  { %v524_v18 = vpack.i.bf16 %v465_v17, %v471_v16  ;;  %v473_v20 = vsel %vm176_vm10, 1.0, %v610_v49  ;;  %vm343_vm14 = vcmask 1044484   ;;  %vm345_vm15 = vcmask 1045509  }
 0x149   :  { %v529_v21 = vpack.i.bf16 %v473_v20, %v472_v19  ;;  %vm347_vm0 = vcmask 1046534   ;;  %vm437_vm2 = vcmask 261120  }
 0x14b   :  { %504 = vperm.xlu1 %492, %v503_v5  }
 0x14f   :  { %509 = vperm.xlu1 %492, %v508_v10  }
 0x153   :  { %520 = vperm.xlu1 %492, %v519_v14  }
 0x157   :  { %525 = vperm.xlu1 %492, %v524_v18  }
 0x15b   :  { %530 = vperm.xlu1 %492, %v529_v21  }
 0x1c0   :  { %v495_v23 = vpop.permute.xlu1 %494 }
 0x1c1   :  { %v497_v27 = vunpack.i.h.bf16 %v495_v23  ;;  %v496_v28 = vunpack.i.l.bf16 %v495_v23 }
 0x1c3   :  { %v280_v32 = vrot.slane %v497_v27, %v275_v26  ;;  %v276_v33 = vrot.slane %v496_v28, %v275_v26 }
 0x1c5   :  { %v338_v2 = vsel %vm337_vm11, %v280_v32, %v276_v33 }
 0x1c6   :  { %v500_v24 = vpop.permute.xlu1 %499  ;;  %v516_v35 = vpop.permute.xlu0 %515 }
 0x1c7   :  { %v501_v29 = vunpack.i.l.bf16 %v500_v24  ;;  %v502_v40 = vunpack.i.h.bf16 %v500_v24  ;;  %v518_v15 = vunpack.i.h.bf16 %v516_v35  ;;  %v517_v49 = vunpack.i.l.bf16 %v516_v35 }
 0x1c9   :  { %v284_v36 = vrot.slane %v501_v29, %v275_v26  ;;  %v308_v50 = vrot.slane %v502_v40, %v275_v26  ;;  %v296_v54 = vrot.slane %v518_v15, %v275_v26  ;;  %v320_v62 = vrot.slane %v517_v49, %v275_v26 }
 0x1ca   :  { %v505_v25 = vpop.permute.xlu1 %504 }
 0x1cb   :  { %v507_v30 = vunpack.i.h.bf16 %v505_v25  ;;  %v506_v37 = vunpack.i.l.bf16 %v505_v25  ;;  %v340_v44 = vsel %vm339_vm12, %v284_v36, %v338_v2 }
 0x1cd   :  { %v288_v38 = vrot.slane %v507_v30, %v275_v26  ;;  %v312_v45 = vrot.slane %v506_v37, %v275_v26 }
 0x1ce   :  { %v510_v31 = vpop.permute.xlu1 %509 }
 0x1cf   :  { %v512_v34 = vunpack.i.h.bf16 %v510_v31  ;;  %v511_v39 = vunpack.i.l.bf16 %v510_v31  ;;  %v342_v46 = vsel %vm341_vm13, %v288_v38, %v340_v44  ;;  %v351_v57 = vsel %vm337_vm11, %v312_v45, %v308_v50 }
 0x1d1   :  { %v292_v41 = vrot.slane %v512_v34, %v275_v26  ;;  %v316_v47 = vrot.slane %v511_v39, %v275_v26 }
 0x1d2   :  { %v521_v42 = vpop.permute.xlu1 %520 }
 0x1d3   :  { %v523_v43 = vunpack.i.h.bf16 %v521_v42  ;;  %v522_v48 = vunpack.i.l.bf16 %v521_v42  ;;  %v344_v53 = vsel %vm343_vm14, %v292_v41, %v342_v46  ;;  %v352_v58 = vsel %vm339_vm12, %v316_v47, %v351_v57 }
 0x1d4   :  { %v346_v61 = vsel %vm345_vm15, %v296_v54, %v344_v53  ;;  %v353_v6 = vsel %vm341_vm13, %v320_v62, %v352_v58 }
 0x1d5   :  { %v300_v51 = vrot.slane %v523_v43, %v275_v26  ;;  %v324_v59 = vrot.slane %v522_v48, %v275_v26 }
 0x1d6   :  { %v526_v52 = vpop.permute.xlu1 %525 }
 0x1d7   :  { %v528_v55 = vunpack.i.h.bf16 %v526_v52  ;;  %v527_v56 = vunpack.i.l.bf16 %v526_v52  ;;  %v348_v1 = vsel %vm347_vm0, %v300_v51, %v346_v61  ;;  %v354_v7 = vsel %vm343_vm14, %v324_v59, %v353_v6 }
 0x1d9   :  { %v304_v60 = vrot.slane %v528_v55, %v275_v26  ;;  %v328_v63 = vrot.slane %v527_v56, %v275_v26 }
 0x1da   :  { %v531_v0 = vpop.permute.xlu1 %530 }
 0x1db   :  { %v533_v3 = vunpack.i.h.bf16 %v531_v0  ;;  %v532_v4 = vunpack.i.l.bf16 %v531_v0  ;;  %v350_v5 = vsel %vm349_vm1, %v304_v60, %v348_v1  ;;  %v355_v10 = vsel %vm345_vm15, %v328_v63, %v354_v7 }
 0x1dc   :  { %481 = vmatprep.mubr.msk.f32.mxu0 %vm102_vm4, %v350_v5 }
 0x1dd   :  { %v336_v8 = vrot.slane %v533_v3, %v275_v26  ;;  %v332_v9 = vrot.slane %v532_v4, %v275_v26 }
 0x1df   :  { %v356_v11 = vsel %vm347_vm0, %v332_v9, %v355_v10 }
 0x1e0   :  { %v357_v12 = vsel %vm349_vm1, %v336_v8, %v356_v11 }
 0x1e1   :  { %482 = vmatmul.mubr.msk.f32.vlgmr.msra.gmra.mrb[0].mxu0 %vm102_vm4, %v357_v12 }
 0x2b4   :  { %v483_v13 = vpop.f32.mrb[0].mxu0 }
 0x2b5   :  { %439 = vst.msk [vmem:[#allocation7 + $0x8] sm:$0xff] %vm437_vm2, %v483_v13  ;;  %v428_v14 = vpop.f32.mrb[1].mxu0 }
 0x2b6   :  { %438 = vst.msk [vmem:[#allocation7] sm:$0xff] %vm437_vm2, %v428_v14 }
 0x2b7   :  { %589 = shalt.err (!%p586_p6)
}
 0x2b8   :  { %s590_s8 = scalar_lea.hbm %s710_s2, 256 }
 0x2b9   :  { %p591_p7 = scmp.ne.s32.totalorder %s710_s2, %s590_s8  ;;  %p594_p8 = scmp.lt.u32.totalorder %s590_s8, %s710_s2 }
 0x2bb   :  { %p596_p9 = pnand %p594_p8, %p591_p7 }
 0x2bd   :  { %599 = shalt.err (!%p596_p9)
}
 0x2be   :  { %s612_s13 = smov 128   ;;  %s613_s14 = smov 8  }
 0x2bf   :  { %451 = dma.vmem_to_hbm [thread:$0]  %s446_s4, 256, %s710_s2, [#allocation4], %s612_s13, %s612_s13, %s613_s14  }
 0x2c0   :  { %604 = dma.done.wait [#allocation4], 256  }
 0x2c1   :  { %605 = vsyncadd [#allocation4], 4294967040 }
 0x2c2   :  { %455 = vsyncpa [#allocation3], 1 }
 0x2c3   :  { %456 = vsyncpa [#allocation6], 1 }
 0x2c4   :  { %457 = vsyncpa [#allocation4], 1 }

</bundles_post_ra>
